<compile_context>
chip_gen: v7x
topology: tpu7x:2x2x1
jax: 0.10.0
libtpu: 0.0.40
codegen_flags: <defaults>
</compile_context>

<pallas_src>
import functools

import jax
import jax.numpy as jnp
import numpy as np
from jax.experimental import pallas as pl
from jax.experimental.pallas import tpu as pltpu

_VMEM = pl.BlockSpec(memory_space=pltpu.MemorySpace.VMEM)
_SMEM = pl.BlockSpec(memory_space=pltpu.MemorySpace.SMEM)


def _round_up(x, m):
    return ((x + m - 1) // m) * m


# ------------------------------ fused kernel --------------------------------

def _gin_dc_fused_kernel(A_ref, P_ref, hf_ref, sf_ref,
                         Weh_ref, beh_ref, Wes_ref, bes_ref,
                         W1h_ref, W2h_ref, affh_ref,
                         W1s_ref, W2s_ref, affs_ref,
                         Wp_ref, bp_ref, eps_ref,
                         o_ref, hcat_ref, *, L, H):
    f32 = jnp.float32
    bf16 = jnp.bfloat16

    def mm(a, b):
        # bf16 MXU inputs, f32 accumulation.
        return jnp.dot(a.astype(bf16), b.astype(bf16), preferred_element_type=f32)

    A = A_ref[...]          # (N, N)  bf16, 0/1
    Pm = P_ref[...]         # (Gp, N) bf16, 0/1 (rows >= n_graphs are zero padding)

    # --- embeddings ---------------------------------------------------------
    h = mm(hf_ref[...], Weh_ref[...]) + beh_ref[...]          # (N, H) f32
    s = mm(sf_ref[...], Wes_ref[...]) + bes_ref[...]          # (N, H) f32

    # cat(h, s) lives in a single VMEM slab; channels written to adjacent columns.
    hcat_ref[:, 0:H] = h
    hcat_ref[:, H:2 * H] = s
    hcat = hcat_ref[...]                                      # (N, 2H) f32

    # --- readout of hidden_rep[0] -------------------------------------------
    score = mm(mm(Pm, hcat), Wp_ref[0]) + bp_ref[0]           # (Gp, Cp) f32

    # --- GIN layers (static unrolled loop, everything stays on-chip) --------
    for i in range(L):
        # h channel: input = cat(h, s) (width 2H); residual auto-disabled (2H != H)
        aff_h = affh_ref[i]                                   # (6, H) f32
        agg = mm(A, hcat) + (1.0 + eps_ref[2 * i]) * hcat
        t = jnp.maximum(mm(agg, W1h_ref[i]) * aff_h[0:1] + aff_h[1:2], 0.0)  # lin1+BN1+relu
        t = mm(t, W2h_ref[i])                                                # lin2 (bias folded)
        t = jnp.maximum(t * aff_h[2:3] + aff_h[3:4], 0.0)                    # ApplyNodeFunc BN+relu
        h = jnp.maximum(t * aff_h[4:5] + aff_h[5:6], 0.0)                    # bn_node_h + relu

        # s channel: input = s (width H); residual kept; followed by tanh
        aff_s = affs_ref[i]
        aggs = mm(A, s) + (1.0 + eps_ref[2 * i + 1]) * s
        u = jnp.maximum(mm(aggs, W1s_ref[i]) * aff_s[0:1] + aff_s[1:2], 0.0)
        u = mm(u, W2s_ref[i])
        u = jnp.maximum(u * aff_s[2:3] + aff_s[3:4], 0.0)
        u = jnp.maximum(u * aff_s[4:5] + aff_s[5:6], 0.0)
        s = jnp.tanh(u + s)

        # hidden_rep[i+1] and its pooled prediction, accumulated in-register.
        # TODO(synk): reference appends `h` (N,H) but linears_prediction expects 2H — a
        # shape bug in the original module; we append cat(h, s) to match __init__ dims.
        hcat_ref[:, 0:H] = h
        hcat_ref[:, H:2 * H] = s
        hcat = hcat_ref[...]
        score = score + mm(mm(Pm, hcat), Wp_ref[i + 1]) + bp_ref[i + 1]

    o_ref[...] = score        # single lane-dense (Gp x Cp) store


# -------------------------- packing / wrapper --------------------------------

def _pack_inputs(A, P, h_feat, s_feat, params, L):
    f32, bf16 = jnp.float32, jnp.bfloat16
    N = A.shape[0]
    G = P.shape[0]
    H = params["emb_h"]["Wt"].shape[1]
    C = params["pred"][0]["Wt"].shape[1]
    G_pad = _round_up(max(G, 8), 8)         # sublane-aligned pooled rows
    C_pad = _round_up(max(C, 128), 128)     # lane-dense output columns

    P_pad = jnp.zeros((G_pad, N), f32).at[:G, :].set(P).astype(bf16)

    Wp = jnp.stack([p["Wt"] for p in params["pred"]])                    # (L+1, 2H, C)
    Wp = jnp.pad(Wp, ((0, 0), (0, 0), (0, C_pad - C))).astype(bf16)
    bp = jnp.stack([p["b"] for p in params["pred"]])[:, None, :]         # (L+1, 1, C)
    bp = jnp.pad(bp, ((0, 0), (0, 0), (0, C_pad - C))).astype(f32)

    def aff(p):
        # Fold Linear biases + eval-mode BN into (scale, shift) epilogues.
        s1 = p["bn1"]["scale"]
        sh1 = p["lin1"]["b"] * s1 + p["bn1"]["shift"]
        s2 = p["abn"]["scale"]
        sh2 = p["lin2"]["b"] * s2 + p["abn"]["shift"]
        s3 = p["nbn"]["scale"]
        sh3 = p["nbn"]["shift"]
        return jnp.stack([s1, sh1, s2, sh2, s3, sh3]).astype(f32)        # (6, H)

    W1h = jnp.stack([p["lin1"]["Wt"] for p in params["gin_h"]]).astype(bf16)  # (L, 2H, H)
    W2h = jnp.stack([p["lin2"]["Wt"] for p in params["gin_h"]]).astype(bf16)  # (L,  H, H)
    affh = jnp.stack([aff(p) for p in params["gin_h"]])                       # (L, 6, H)
    W1s = jnp.stack([p["lin1"]["Wt"] for p in params["gin_s"]]).astype(bf16)  # (L,  H, H)
    W2s = jnp.stack([p["lin2"]["Wt"] for p in params["gin_s"]]).astype(bf16)
    affs = jnp.stack([aff(p) for p in params["gin_s"]])

    eps = jnp.stack([params[ch][i]["eps"]
                     for i in range(L) for ch in ("gin_h", "gin_s")]).astype(f32)  # (2L,)

    inputs = [
        A.astype(bf16), P_pad,
        h_feat.astype(f32), s_feat.astype(f32),
        params["emb_h"]["Wt"].astype(bf16), params["emb_h"]["b"].reshape(1, H).astype(f32),
        params["emb_s"]["Wt"].astype(bf16), params["emb_s"]["b"].reshape(1, H).astype(f32),
        W1h, W2h, affh, W1s, W2s, affs,
        Wp, bp, eps,
    ]
    in_specs = [_VMEM] * 16 + [_SMEM]
    return inputs, in_specs, G, C, G_pad, C_pad, H, N


def gin_net_dc_forward(A, P, h_feat, s_feat, params, L):
    inputs, in_specs, G, C, G_pad, C_pad, H, N = _pack_inputs(A, P, h_feat, s_feat, params, L)
    out = pl.pallas_call(
        functools.partial(_gin_dc_fused_kernel, L=L, H=H),
        out_shape=jax.ShapeDtypeStruct((G_pad, C_pad), jnp.float32),
        in_specs=in_specs,
        out_specs=_VMEM,
        scratch_shapes=[pltpu.VMEM((N, 2 * H), jnp.float32)],   # resident cat(h, s) slab
    )(*inputs)
    return out[:G, :C]


# ------------------------- deterministic parameters -------------------------

def _linear(key, in_d, out_d):
    kw, kb = jax.random.split(key)
    w = 0.1 * jax.random.normal(kw, (out_d, in_d), jnp.float32)   # torch (out, in)
    b = 0.1 * jax.random.normal(kb, (out_d,), jnp.float32)
    return {"Wt": w.T, "b": b}                                     # stored pre-transposed


def _bn(key, d):
    """Eval-mode BatchNorm1d folded into (scale, shift)."""
    kg, kb, km, kv = jax.random.split(key, 4)
    gamma = 1.0 + 0.1 * jax.random.normal(kg, (d,), jnp.float32)
    beta = 0.1 * jax.random.normal(kb, (d,), jnp.float32)
    mean = 0.1 * jax.random.normal(km, (d,), jnp.float32)
    var = 1.0 + 0.1 * jax.random.uniform(kv, (d,), jnp.float32)
    scale = gamma / jnp.sqrt(var + 1e-5)
    shift = beta - mean * scale
    return {"scale": scale, "shift": shift}


def _gin_params(key, in_d, hid):
    ks = jax.random.split(key, 5)
    return {
        "eps": jnp.float32(0.0),              # learn_eps_GIN, init 0
        "lin1": _linear(ks[0], in_d, hid),    # MLP (n_mlp_GIN=2) layer 0
        "bn1": _bn(ks[1], hid),               # MLP batch_norms[0]
        "lin2": _linear(ks[2], hid, hid),     # MLP layer 1
        "abn": _bn(ks[3], hid),               # ApplyNodeFunc.bn
        "nbn": _bn(ks[4], hid),               # GINLayer.bn_node_h
    }


def init_gin_net_params(key, in_dim, hidden, n_classes, L):
    keys = jax.random.split(key, 3 * L + 3)
    it = iter(keys)
    return {
        "emb_h": _linear(next(it), in_dim, hidden),
        "emb_s": _linear(next(it), in_dim, hidden),
        # reference __init__ forgets `self.ginlayers_s = ModuleList()`; created here.
        "gin_h": [_gin_params(next(it), 2 * hidden, hidden) for _ in range(L)],
        "gin_s": [_gin_params(next(it), hidden, hidden) for _ in range(L)],
        "pred": [_linear(next(it), 2 * hidden, n_classes) for _ in range(L + 1)],
    }


# --------------------------- pure-JAX reference ------------------------------
# Numerics-matched reference: identical op order with bf16 MXU inputs / f32 accumulation
# (the kernel's precision mode), so the tolerance check stays tight.

def ref_forward(A, P, h_feat, s_feat, params, L):
    bf16 = jnp.bfloat16

    def mm(a, b):
        return jnp.dot(a.astype(bf16), b.astype(bf16), preferred_element_type=jnp.float32)

    def lin(x, p): return mm(x, p["Wt"]) + p["b"]
    def bn(x, p): return x * p["scale"] + p["shift"]

    def gin(x, p, residual, post_tanh=False):
        h_in = x
        agg = (1.0 + p["eps"]) * x + mm(A, x)
        t = jax.nn.relu(bn(lin(agg, p["lin1"]), p["bn1"]))
        t = lin(t, p["lin2"])
        t = jax.nn.relu(bn(t, p["abn"]))
        t = jax.nn.relu(bn(t, p["nbn"]))
        if residual:
            t = t + h_in
        if post_tanh:
            t = jnp.tanh(t)
        return t

    h = lin(h_feat, params["emb_h"])
    s = lin(s_feat, params["emb_s"])
    hidden_rep = [jnp.concatenate([h, s], -1)]
    for i in range(L):
        h = gin(jnp.concatenate([h, s], -1), params["gin_h"][i], False)
        s = gin(s, params["gin_s"][i], True, post_tanh=True)
        hidden_rep.append(jnp.concatenate([h, s], -1))
    score = 0.0
    for i, hr in enumerate(hidden_rep):
        score = score + mm(mm(P, hr), params["pred"][i]["Wt"]) + params["pred"][i]["b"]
    return score


# ---------------------------------- main -------------------------------------

if __name__ == "__main__":
    in_dim, hidden, n_classes, L = 8, 32, 4, 2
    n_nodes, n_graphs = 16, 2

    key = jax.random.PRNGKey(0)
    kp, ka, kh, ks = jax.random.split(key, 4)
    params = init_gin_net_params(kp, in_dim, hidden, n_classes, L)

    # batched graph: nodes 0..7 -> graph 0, 8..15 -> graph 1 (block-diag adjacency)
    graph_id = jnp.repeat(jnp.arange(n_graphs), n_nodes // n_graphs)
    same_graph = (graph_id[:, None] == graph_id[None, :]).astype(jnp.float32)
    A = (jax.random.uniform(ka, (n_nodes, n_nodes)) < 0.4).astype(jnp.float32) * same_graph
    P = (graph_id[None, :] == jnp.arange(n_graphs)[:, None]).astype(jnp.float32)

    h_feat = jax.random.normal(kh, (n_nodes, in_dim), jnp.float32)
    s_feat = jax.random.normal(ks, (n_nodes, in_dim), jnp.float32)

    fwd = jax.jit(gin_net_dc_forward, static_argnames=("L",))
    out = jax.block_until_ready(fwd(A, P, h_feat, s_feat, params, L=L))
    assert out.shape == (n_graphs, n_classes)

    ref = ref_forward(A, P, h_feat, s_feat, params, L)
    np.testing.assert_allclose(np.asarray(out), np.asarray(ref), rtol=2e-2, atol=2e-2)

    print("KERNEL_OK")
</pallas_src>

<mosaic_0001>
module attributes {stable_mosaic.version = 11 : i64} {
  func.func @_gin_dc_fused_kernel(%arg0: memref<16x16xbf16, #tpu.memory_space<vmem>>, %arg1: memref<8x16xbf16, #tpu.memory_space<vmem>>, %arg2: memref<16x8xf32, #tpu.memory_space<vmem>>, %arg3: memref<16x8xf32, #tpu.memory_space<vmem>>, %arg4: memref<8x32xbf16, #tpu.memory_space<vmem>>, %arg5: memref<1x32xf32, #tpu.memory_space<vmem>>, %arg6: memref<8x32xbf16, #tpu.memory_space<vmem>>, %arg7: memref<1x32xf32, #tpu.memory_space<vmem>>, %arg8: memref<2x64x32xbf16, #tpu.memory_space<vmem>>, %arg9: memref<2x32x32xbf16, #tpu.memory_space<vmem>>, %arg10: memref<2x6x32xf32, #tpu.memory_space<vmem>>, %arg11: memref<2x32x32xbf16, #tpu.memory_space<vmem>>, %arg12: memref<2x32x32xbf16, #tpu.memory_space<vmem>>, %arg13: memref<2x6x32xf32, #tpu.memory_space<vmem>>, %arg14: memref<3x64x128xbf16, #tpu.memory_space<vmem>>, %arg15: memref<3x1x128xf32, #tpu.memory_space<vmem>>, %arg16: memref<4xf32, #tpu.memory_space<smem>>, %arg17: memref<8x128xf32, #tpu.memory_space<vmem>>, %arg18: memref<16x64xf32, #tpu.memory_space<vmem>>) attributes {dimension_semantics = [], scalar_prefetch = 0 : i64, scratch_operands = 1 : i64, tpu.core_type = #tpu.core_type<tc>} {
    %c0 = arith.constant 0 : index
    %c0_0 = arith.constant 0 : index
    %0 = vector.load %arg0[%c0, %c0_0] : memref<16x16xbf16, #tpu.memory_space<vmem>>, vector<16x16xbf16>
    %c0_1 = arith.constant 0 : index
    %c0_2 = arith.constant 0 : index
    %1 = vector.load %arg1[%c0_1, %c0_2] : memref<8x16xbf16, #tpu.memory_space<vmem>>, vector<8x16xbf16>
    %c0_3 = arith.constant 0 : index
    %c0_4 = arith.constant 0 : index
    %2 = vector.load %arg2[%c0_3, %c0_4] : memref<16x8xf32, #tpu.memory_space<vmem>>, vector<16x8xf32>
    %c0_5 = arith.constant 0 : index
    %c0_6 = arith.constant 0 : index
    %3 = vector.load %arg4[%c0_5, %c0_6] : memref<8x32xbf16, #tpu.memory_space<vmem>>, vector<8x32xbf16>
    %4 = arith.truncf %2 : vector<16x8xf32> to vector<16x8xbf16>
    %cst = arith.constant dense<0.000000e+00> : vector<16x32xf32>
    %5 = tpu.matmul %4, %3, %cst {dimension_numbers = #tpu.dot_dimension_numbers<[1], [0], [0], [1], [0, 0, 1, 1], [], []>} : vector<16x8xbf16>, vector<8x32xbf16>, vector<16x32xf32> -> vector<16x32xf32>
    %c0_7 = arith.constant 0 : index
    %c0_8 = arith.constant 0 : index
    %6 = vector.load %arg5[%c0_7, %c0_8] : memref<1x32xf32, #tpu.memory_space<vmem>>, vector<1x32xf32>
    %7 = vector.broadcast %6 : vector<1x32xf32> to vector<16x32xf32>
    %8 = arith.addf %5, %7 : vector<16x32xf32>
    %c0_9 = arith.constant 0 : index
    %c0_10 = arith.constant 0 : index
    %9 = vector.load %arg3[%c0_9, %c0_10] : memref<16x8xf32, #tpu.memory_space<vmem>>, vector<16x8xf32>
    %c0_11 = arith.constant 0 : index
    %c0_12 = arith.constant 0 : index
    %10 = vector.load %arg6[%c0_11, %c0_12] : memref<8x32xbf16, #tpu.memory_space<vmem>>, vector<8x32xbf16>
    %11 = arith.truncf %9 : vector<16x8xf32> to vector<16x8xbf16>
    %cst_13 = arith.constant dense<0.000000e+00> : vector<16x32xf32>
    %12 = tpu.matmul %11, %10, %cst_13 {dimension_numbers = #tpu.dot_dimension_numbers<[1], [0], [0], [1], [0, 0, 1, 1], [], []>} : vector<16x8xbf16>, vector<8x32xbf16>, vector<16x32xf32> -> vector<16x32xf32>
    %c0_14 = arith.constant 0 : index
    %c0_15 = arith.constant 0 : index
    %13 = vector.load %arg7[%c0_14, %c0_15] : memref<1x32xf32, #tpu.memory_space<vmem>>, vector<1x32xf32>
    %14 = vector.broadcast %13 : vector<1x32xf32> to vector<16x32xf32>
    %15 = arith.addf %12, %14 : vector<16x32xf32>
    %c0_16 = arith.constant 0 : index
    %c0_17 = arith.constant 0 : index
    %16 = vector.load %arg18[%c0_16, %c0_17] : memref<16x64xf32, #tpu.memory_space<vmem>>, vector<16x32xf32>
    tpu.vector_store %arg18[%c0_16, %c0_17], %8 {strides = array<i32>} : memref<16x64xf32, #tpu.memory_space<vmem>>, vector<16x32xf32>,
    %c0_18 = arith.constant 0 : index
    %c32 = arith.constant 32 : index
    %17 = vector.load %arg18[%c0_18, %c32] : memref<16x64xf32, #tpu.memory_space<vmem>>, vector<16x32xf32>
    tpu.vector_store %arg18[%c0_18, %c32], %15 {strides = array<i32>} : memref<16x64xf32, #tpu.memory_space<vmem>>, vector<16x32xf32>,
    %c0_19 = arith.constant 0 : index
    %c0_20 = arith.constant 0 : index
    %18 = vector.load %arg18[%c0_19, %c0_20] : memref<16x64xf32, #tpu.memory_space<vmem>>, vector<16x64xf32>
    %19 = arith.truncf %18 : vector<16x64xf32> to vector<16x64xbf16>
    %cst_21 = arith.constant dense<0.000000e+00> : vector<8x64xf32>
    %20 = tpu.matmul %1, %19, %cst_21 {dimension_numbers = #tpu.dot_dimension_numbers<[1], [0], [0], [1], [0, 0, 1, 1], [], []>} : vector<8x16xbf16>, vector<16x64xbf16>, vector<8x64xf32> -> vector<8x64xf32>
    %c0_22 = arith.constant 0 : index
    %c0_23 = arith.constant 0 : index
    %c0_24 = arith.constant 0 : index
    %21 = vector.load %arg14[%c0_22, %c0_23, %c0_24] : memref<3x64x128xbf16, #tpu.memory_space<vmem>>, vector<1x64x128xbf16>
    %22 = vector.shape_cast %21 : vector<1x64x128xbf16> to vector<64x128xbf16>
    %23 = arith.truncf %20 : vector<8x64xf32> to vector<8x64xbf16>
    %cst_25 = arith.constant dense<0.000000e+00> : vector<8x128xf32>
    %24 = tpu.matmul %23, %22, %cst_25 {dimension_numbers = #tpu.dot_dimension_numbers<[1], [0], [0], [1], [0, 0, 1, 1], [], []>} : vector<8x64xbf16>, vector<64x128xbf16>, vector<8x128xf32> -> vector<8x128xf32>
    %c0_26 = arith.constant 0 : index
    %c0_27 = arith.constant 0 : index
    %c0_28 = arith.constant 0 : index
    %25 = vector.load %arg15[%c0_26, %c0_27, %c0_28] : memref<3x1x128xf32, #tpu.memory_space<vmem>>, vector<1x1x128xf32>
    %26 = vector.shape_cast %25 : vector<1x1x128xf32> to vector<1x128xf32>
    %27 = vector.broadcast %26 : vector<1x128xf32> to vector<8x128xf32>
    %28 = arith.addf %24, %27 : vector<8x128xf32>
    %c0_29 = arith.constant 0 : index
    %c0_30 = arith.constant 0 : index
    %c0_31 = arith.constant 0 : index
    %29 = vector.load %arg10[%c0_29, %c0_30, %c0_31] : memref<2x6x32xf32, #tpu.memory_space<vmem>>, vector<1x6x32xf32>
    %30 = vector.shape_cast %29 : vector<1x6x32xf32> to vector<6x32xf32>
    %31 = arith.truncf %18 : vector<16x64xf32> to vector<16x64xbf16>
    %cst_32 = arith.constant dense<0.000000e+00> : vector<16x64xf32>
    %32 = tpu.matmul %0, %31, %cst_32 {dimension_numbers = #tpu.dot_dimension_numbers<[1], [0], [0], [1], [0, 0, 1, 1], [], []>} : vector<16x16xbf16>, vector<16x64xbf16>, vector<16x64xf32> -> vector<16x64xf32>
    %c0_33 = arith.constant 0 : index
    %33 = memref.load %arg16[%c0_33] : memref<4xf32, #tpu.memory_space<smem>>
    %cst_34 = arith.constant 1.000000e+00 : f32
    %34 = arith.addf %cst_34, %33 : f32
    %35 = vector.broadcast %34 : f32 to vector<16x64xf32>
    %36 = arith.mulf %35, %18 : vector<16x64xf32>
    %37 = arith.addf %32, %36 : vector<16x64xf32>
    %c0_35 = arith.constant 0 : index
    %c0_36 = arith.constant 0 : index
    %c0_37 = arith.constant 0 : index
    %38 = vector.load %arg8[%c0_35, %c0_36, %c0_37] : memref<2x64x32xbf16, #tpu.memory_space<vmem>>, vector<1x64x32xbf16>
    %39 = vector.shape_cast %38 : vector<1x64x32xbf16> to vector<64x32xbf16>
    %40 = arith.truncf %37 : vector<16x64xf32> to vector<16x64xbf16>
    %cst_38 = arith.constant dense<0.000000e+00> : vector<16x32xf32>
    %41 = tpu.matmul %40, %39, %cst_38 {dimension_numbers = #tpu.dot_dimension_numbers<[1], [0], [0], [1], [0, 0, 1, 1], [], []>} : vector<16x64xbf16>, vector<64x32xbf16>, vector<16x32xf32> -> vector<16x32xf32>
    %42 = vector.extract_strided_slice %30 {offsets = [0, 0], sizes = [1, 32], strides = [1, 1]} : vector<6x32xf32> to vector<1x32xf32>
    %43 = vector.broadcast %42 : vector<1x32xf32> to vector<16x32xf32>
    %44 = arith.mulf %41, %43 : vector<16x32xf32>
    %45 = vector.extract_strided_slice %30 {offsets = [1, 0], sizes = [1, 32], strides = [1, 1]} : vector<6x32xf32> to vector<1x32xf32>
    %46 = vector.broadcast %45 : vector<1x32xf32> to vector<16x32xf32>
    %47 = arith.addf %44, %46 : vector<16x32xf32>
    %cst_39 = arith.constant 0.000000e+00 : f32
    %48 = vector.broadcast %cst_39 : f32 to vector<16x32xf32>
    %49 = arith.maximumf %47, %48 : vector<16x32xf32>
    %c0_40 = arith.constant 0 : index
    %c0_41 = arith.constant 0 : index
    %c0_42 = arith.constant 0 : index
    %50 = vector.load %arg9[%c0_40, %c0_41, %c0_42] : memref<2x32x32xbf16, #tpu.memory_space<vmem>>, vector<1x32x32xbf16>
    %51 = vector.shape_cast %50 : vector<1x32x32xbf16> to vector<32x32xbf16>
    %52 = arith.truncf %49 : vector<16x32xf32> to vector<16x32xbf16>
    %cst_43 = arith.constant dense<0.000000e+00> : vector<16x32xf32>
    %53 = tpu.matmul %52, %51, %cst_43 {dimension_numbers = #tpu.dot_dimension_numbers<[1], [0], [0], [1], [0, 0, 1, 1], [], []>} : vector<16x32xbf16>, vector<32x32xbf16>, vector<16x32xf32> -> vector<16x32xf32>
    %54 = vector.extract_strided_slice %30 {offsets = [2, 0], sizes = [1, 32], strides = [1, 1]} : vector<6x32xf32> to vector<1x32xf32>
    %55 = vector.broadcast %54 : vector<1x32xf32> to vector<16x32xf32>
    %56 = arith.mulf %53, %55 : vector<16x32xf32>
    %57 = vector.extract_strided_slice %30 {offsets = [3, 0], sizes = [1, 32], strides = [1, 1]} : vector<6x32xf32> to vector<1x32xf32>
    %58 = vector.broadcast %57 : vector<1x32xf32> to vector<16x32xf32>
    %59 = arith.addf %56, %58 : vector<16x32xf32>
    %cst_44 = arith.constant 0.000000e+00 : f32
    %60 = vector.broadcast %cst_44 : f32 to vector<16x32xf32>
    %61 = arith.maximumf %59, %60 : vector<16x32xf32>
    %62 = vector.extract_strided_slice %30 {offsets = [4, 0], sizes = [1, 32], strides = [1, 1]} : vector<6x32xf32> to vector<1x32xf32>
    %63 = vector.broadcast %62 : vector<1x32xf32> to vector<16x32xf32>
    %64 = arith.mulf %61, %63 : vector<16x32xf32>
    %65 = vector.extract_strided_slice %30 {offsets = [5, 0], sizes = [1, 32], strides = [1, 1]} : vector<6x32xf32> to vector<1x32xf32>
    %66 = vector.broadcast %65 : vector<1x32xf32> to vector<16x32xf32>
    %67 = arith.addf %64, %66 : vector<16x32xf32>
    %cst_45 = arith.constant 0.000000e+00 : f32
    %68 = vector.broadcast %cst_45 : f32 to vector<16x32xf32>
    %69 = arith.maximumf %67, %68 : vector<16x32xf32>
    %c0_46 = arith.constant 0 : index
    %c0_47 = arith.constant 0 : index
    %c0_48 = arith.constant 0 : index
    %70 = vector.load %arg13[%c0_46, %c0_47, %c0_48] : memref<2x6x32xf32, #tpu.memory_space<vmem>>, vector<1x6x32xf32>
    %71 = vector.shape_cast %70 : vector<1x6x32xf32> to vector<6x32xf32>
    %72 = arith.truncf %15 : vector<16x32xf32> to vector<16x32xbf16>
    %cst_49 = arith.constant dense<0.000000e+00> : vector<16x32xf32>
    %73 = tpu.matmul %0, %72, %cst_49 {dimension_numbers = #tpu.dot_dimension_numbers<[1], [0], [0], [1], [0, 0, 1, 1], [], []>} : vector<16x16xbf16>, vector<16x32xbf16>, vector<16x32xf32> -> vector<16x32xf32>
    %c1 = arith.constant 1 : index
    %74 = memref.load %arg16[%c1] : memref<4xf32, #tpu.memory_space<smem>>
    %cst_50 = arith.constant 1.000000e+00 : f32
    %75 = arith.addf %cst_50, %74 : f32
    %76 = vector.broadcast %75 : f32 to vector<16x32xf32>
    %77 = arith.mulf %76, %15 : vector<16x32xf32>
    %78 = arith.addf %73, %77 : vector<16x32xf32>
    %c0_51 = arith.constant 0 : index
    %c0_52 = arith.constant 0 : index
    %c0_53 = arith.constant 0 : index
    %79 = vector.load %arg11[%c0_51, %c0_52, %c0_53] : memref<2x32x32xbf16, #tpu.memory_space<vmem>>, vector<1x32x32xbf16>
    %80 = vector.shape_cast %79 : vector<1x32x32xbf16> to vector<32x32xbf16>
    %81 = arith.truncf %78 : vector<16x32xf32> to vector<16x32xbf16>
    %cst_54 = arith.constant dense<0.000000e+00> : vector<16x32xf32>
    %82 = tpu.matmul %81, %80, %cst_54 {dimension_numbers = #tpu.dot_dimension_numbers<[1], [0], [0], [1], [0, 0, 1, 1], [], []>} : vector<16x32xbf16>, vector<32x32xbf16>, vector<16x32xf32> -> vector<16x32xf32>
    %83 = vector.extract_strided_slice %71 {offsets = [0, 0], sizes = [1, 32], strides = [1, 1]} : vector<6x32xf32> to vector<1x32xf32>
    %84 = vector.broadcast %83 : vector<1x32xf32> to vector<16x32xf32>
    %85 = arith.mulf %82, %84 : vector<16x32xf32>
    %86 = vector.extract_strided_slice %71 {offsets = [1, 0], sizes = [1, 32], strides = [1, 1]} : vector<6x32xf32> to vector<1x32xf32>
    %87 = vector.broadcast %86 : vector<1x32xf32> to vector<16x32xf32>
    %88 = arith.addf %85, %87 : vector<16x32xf32>
    %cst_55 = arith.constant 0.000000e+00 : f32
    %89 = vector.broadcast %cst_55 : f32 to vector<16x32xf32>
    %90 = arith.maximumf %88, %89 : vector<16x32xf32>
    %c0_56 = arith.constant 0 : index
    %c0_57 = arith.constant 0 : index
    %c0_58 = arith.constant 0 : index
    %91 = vector.load %arg12[%c0_56, %c0_57, %c0_58] : memref<2x32x32xbf16, #tpu.memory_space<vmem>>, vector<1x32x32xbf16>
    %92 = vector.shape_cast %91 : vector<1x32x32xbf16> to vector<32x32xbf16>
    %93 = arith.truncf %90 : vector<16x32xf32> to vector<16x32xbf16>
    %cst_59 = arith.constant dense<0.000000e+00> : vector<16x32xf32>
    %94 = tpu.matmul %93, %92, %cst_59 {dimension_numbers = #tpu.dot_dimension_numbers<[1], [0], [0], [1], [0, 0, 1, 1], [], []>} : vector<16x32xbf16>, vector<32x32xbf16>, vector<16x32xf32> -> vector<16x32xf32>
    %95 = vector.extract_strided_slice %71 {offsets = [2, 0], sizes = [1, 32], strides = [1, 1]} : vector<6x32xf32> to vector<1x32xf32>
    %96 = vector.broadcast %95 : vector<1x32xf32> to vector<16x32xf32>
    %97 = arith.mulf %94, %96 : vector<16x32xf32>
    %98 = vector.extract_strided_slice %71 {offsets = [3, 0], sizes = [1, 32], strides = [1, 1]} : vector<6x32xf32> to vector<1x32xf32>
    %99 = vector.broadcast %98 : vector<1x32xf32> to vector<16x32xf32>
    %100 = arith.addf %97, %99 : vector<16x32xf32>
    %cst_60 = arith.constant 0.000000e+00 : f32
    %101 = vector.broadcast %cst_60 : f32 to vector<16x32xf32>
    %102 = arith.maximumf %100, %101 : vector<16x32xf32>
    %103 = vector.extract_strided_slice %71 {offsets = [4, 0], sizes = [1, 32], strides = [1, 1]} : vector<6x32xf32> to vector<1x32xf32>
    %104 = vector.broadcast %103 : vector<1x32xf32> to vector<16x32xf32>
    %105 = arith.mulf %102, %104 : vector<16x32xf32>
    %106 = vector.extract_strided_slice %71 {offsets = [5, 0], sizes = [1, 32], strides = [1, 1]} : vector<6x32xf32> to vector<1x32xf32>
    %107 = vector.broadcast %106 : vector<1x32xf32> to vector<16x32xf32>
    %108 = arith.addf %105, %107 : vector<16x32xf32>
    %cst_61 = arith.constant 0.000000e+00 : f32
    %109 = vector.broadcast %cst_61 : f32 to vector<16x32xf32>
    %110 = arith.maximumf %108, %109 : vector<16x32xf32>
    %111 = arith.addf %110, %15 : vector<16x32xf32>
    %112 = math.tanh %111 : vector<16x32xf32>
    %c0_62 = arith.constant 0 : index
    %c0_63 = arith.constant 0 : index
    %113 = vector.load %arg18[%c0_62, %c0_63] : memref<16x64xf32, #tpu.memory_space<vmem>>, vector<16x32xf32>
    tpu.vector_store %arg18[%c0_62, %c0_63], %69 {strides = array<i32>} : memref<16x64xf32, #tpu.memory_space<vmem>>, vector<16x32xf32>,
    %c0_64 = arith.constant 0 : index
    %c32_65 = arith.constant 32 : index
    %114 = vector.load %arg18[%c0_64, %c32_65] : memref<16x64xf32, #tpu.memory_space<vmem>>, vector<16x32xf32>
    tpu.vector_store %arg18[%c0_64, %c32_65], %112 {strides = array<i32>} : memref<16x64xf32, #tpu.memory_space<vmem>>, vector<16x32xf32>,
    %c0_66 = arith.constant 0 : index
    %c0_67 = arith.constant 0 : index
    %115 = vector.load %arg18[%c0_66, %c0_67] : memref<16x64xf32, #tpu.memory_space<vmem>>, vector<16x64xf32>
    %116 = arith.truncf %115 : vector<16x64xf32> to vector<16x64xbf16>
    %cst_68 = arith.constant dense<0.000000e+00> : vector<8x64xf32>
    %117 = tpu.matmul %1, %116, %cst_68 {dimension_numbers = #tpu.dot_dimension_numbers<[1], [0], [0], [1], [0, 0, 1, 1], [], []>} : vector<8x16xbf16>, vector<16x64xbf16>, vector<8x64xf32> -> vector<8x64xf32>
    %c1_69 = arith.constant 1 : index
    %c0_70 = arith.constant 0 : index
    %c0_71 = arith.constant 0 : index
    %118 = vector.load %arg14[%c1_69, %c0_70, %c0_71] : memref<3x64x128xbf16, #tpu.memory_space<vmem>>, vector<1x64x128xbf16>
    %119 = vector.shape_cast %118 : vector<1x64x128xbf16> to vector<64x128xbf16>
    %120 = arith.truncf %117 : vector<8x64xf32> to vector<8x64xbf16>
    %cst_72 = arith.constant dense<0.000000e+00> : vector<8x128xf32>
    %121 = tpu.matmul %120, %119, %cst_72 {dimension_numbers = #tpu.dot_dimension_numbers<[1], [0], [0], [1], [0, 0, 1, 1], [], []>} : vector<8x64xbf16>, vector<64x128xbf16>, vector<8x128xf32> -> vector<8x128xf32>
    %122 = arith.addf %28, %121 : vector<8x128xf32>
    %c1_73 = arith.constant 1 : index
    %c0_74 = arith.constant 0 : index
    %c0_75 = arith.constant 0 : index
    %123 = vector.load %arg15[%c1_73, %c0_74, %c0_75] : memref<3x1x128xf32, #tpu.memory_space<vmem>>, vector<1x1x128xf32>
    %124 = vector.shape_cast %123 : vector<1x1x128xf32> to vector<1x128xf32>
    %125 = vector.broadcast %124 : vector<1x128xf32> to vector<8x128xf32>
    %126 = arith.addf %122, %125 : vector<8x128xf32>
    %c1_76 = arith.constant 1 : index
    %c0_77 = arith.constant 0 : index
    %c0_78 = arith.constant 0 : index
    %127 = vector.load %arg10[%c1_76, %c0_77, %c0_78] : memref<2x6x32xf32, #tpu.memory_space<vmem>>, vector<1x6x32xf32>
    %128 = vector.shape_cast %127 : vector<1x6x32xf32> to vector<6x32xf32>
    %129 = arith.truncf %115 : vector<16x64xf32> to vector<16x64xbf16>
    %cst_79 = arith.constant dense<0.000000e+00> : vector<16x64xf32>
    %130 = tpu.matmul %0, %129, %cst_79 {dimension_numbers = #tpu.dot_dimension_numbers<[1], [0], [0], [1], [0, 0, 1, 1], [], []>} : vector<16x16xbf16>, vector<16x64xbf16>, vector<16x64xf32> -> vector<16x64xf32>
    %c2 = arith.constant 2 : index
    %131 = memref.load %arg16[%c2] : memref<4xf32, #tpu.memory_space<smem>>
    %cst_80 = arith.constant 1.000000e+00 : f32
    %132 = arith.addf %cst_80, %131 : f32
    %133 = vector.broadcast %132 : f32 to vector<16x64xf32>
    %134 = arith.mulf %133, %115 : vector<16x64xf32>
    %135 = arith.addf %130, %134 : vector<16x64xf32>
    %c1_81 = arith.constant 1 : index
    %c0_82 = arith.constant 0 : index
    %c0_83 = arith.constant 0 : index
    %136 = vector.load %arg8[%c1_81, %c0_82, %c0_83] : memref<2x64x32xbf16, #tpu.memory_space<vmem>>, vector<1x64x32xbf16>
    %137 = vector.shape_cast %136 : vector<1x64x32xbf16> to vector<64x32xbf16>
    %138 = arith.truncf %135 : vector<16x64xf32> to vector<16x64xbf16>
    %cst_84 = arith.constant dense<0.000000e+00> : vector<16x32xf32>
    %139 = tpu.matmul %138, %137, %cst_84 {dimension_numbers = #tpu.dot_dimension_numbers<[1], [0], [0], [1], [0, 0, 1, 1], [], []>} : vector<16x64xbf16>, vector<64x32xbf16>, vector<16x32xf32> -> vector<16x32xf32>
    %140 = vector.extract_strided_slice %128 {offsets = [0, 0], sizes = [1, 32], strides = [1, 1]} : vector<6x32xf32> to vector<1x32xf32>
    %141 = vector.broadcast %140 : vector<1x32xf32> to vector<16x32xf32>
    %142 = arith.mulf %139, %141 : vector<16x32xf32>
    %143 = vector.extract_strided_slice %128 {offsets = [1, 0], sizes = [1, 32], strides = [1, 1]} : vector<6x32xf32> to vector<1x32xf32>
    %144 = vector.broadcast %143 : vector<1x32xf32> to vector<16x32xf32>
    %145 = arith.addf %142, %144 : vector<16x32xf32>
    %cst_85 = arith.constant 0.000000e+00 : f32
    %146 = vector.broadcast %cst_85 : f32 to vector<16x32xf32>
    %147 = arith.maximumf %145, %146 : vector<16x32xf32>
    %c1_86 = arith.constant 1 : index
    %c0_87 = arith.constant 0 : index
    %c0_88 = arith.constant 0 : index
    %148 = vector.load %arg9[%c1_86, %c0_87, %c0_88] : memref<2x32x32xbf16, #tpu.memory_space<vmem>>, vector<1x32x32xbf16>
    %149 = vector.shape_cast %148 : vector<1x32x32xbf16> to vector<32x32xbf16>
    %150 = arith.truncf %147 : vector<16x32xf32> to vector<16x32xbf16>
    %cst_89 = arith.constant dense<0.000000e+00> : vector<16x32xf32>
    %151 = tpu.matmul %150, %149, %cst_89 {dimension_numbers = #tpu.dot_dimension_numbers<[1], [0], [0], [1], [0, 0, 1, 1], [], []>} : vector<16x32xbf16>, vector<32x32xbf16>, vector<16x32xf32> -> vector<16x32xf32>
    %152 = vector.extract_strided_slice %128 {offsets = [2, 0], sizes = [1, 32], strides = [1, 1]} : vector<6x32xf32> to vector<1x32xf32>
    %153 = vector.broadcast %152 : vector<1x32xf32> to vector<16x32xf32>
    %154 = arith.mulf %151, %153 : vector<16x32xf32>
    %155 = vector.extract_strided_slice %128 {offsets = [3, 0], sizes = [1, 32], strides = [1, 1]} : vector<6x32xf32> to vector<1x32xf32>
    %156 = vector.broadcast %155 : vector<1x32xf32> to vector<16x32xf32>
    %157 = arith.addf %154, %156 : vector<16x32xf32>
    %cst_90 = arith.constant 0.000000e+00 : f32
    %158 = vector.broadcast %cst_90 : f32 to vector<16x32xf32>
    %159 = arith.maximumf %157, %158 : vector<16x32xf32>
    %160 = vector.extract_strided_slice %128 {offsets = [4, 0], sizes = [1, 32], strides = [1, 1]} : vector<6x32xf32> to vector<1x32xf32>
    %161 = vector.broadcast %160 : vector<1x32xf32> to vector<16x32xf32>
    %162 = arith.mulf %159, %161 : vector<16x32xf32>
    %163 = vector.extract_strided_slice %128 {offsets = [5, 0], sizes = [1, 32], strides = [1, 1]} : vector<6x32xf32> to vector<1x32xf32>
    %164 = vector.broadcast %163 : vector<1x32xf32> to vector<16x32xf32>
    %165 = arith.addf %162, %164 : vector<16x32xf32>
    %cst_91 = arith.constant 0.000000e+00 : f32
    %166 = vector.broadcast %cst_91 : f32 to vector<16x32xf32>
    %167 = arith.maximumf %165, %166 : vector<16x32xf32>
    %c1_92 = arith.constant 1 : index
    %c0_93 = arith.constant 0 : index
    %c0_94 = arith.constant 0 : index
    %168 = vector.load %arg13[%c1_92, %c0_93, %c0_94] : memref<2x6x32xf32, #tpu.memory_space<vmem>>, vector<1x6x32xf32>
    %169 = vector.shape_cast %168 : vector<1x6x32xf32> to vector<6x32xf32>
    %170 = arith.truncf %112 : vector<16x32xf32> to vector<16x32xbf16>
    %cst_95 = arith.constant dense<0.000000e+00> : vector<16x32xf32>
    %171 = tpu.matmul %0, %170, %cst_95 {dimension_numbers = #tpu.dot_dimension_numbers<[1], [0], [0], [1], [0, 0, 1, 1], [], []>} : vector<16x16xbf16>, vector<16x32xbf16>, vector<16x32xf32> -> vector<16x32xf32>
    %c3 = arith.constant 3 : index
    %172 = memref.load %arg16[%c3] : memref<4xf32, #tpu.memory_space<smem>>
    %cst_96 = arith.constant 1.000000e+00 : f32
    %173 = arith.addf %cst_96, %172 : f32
    %174 = vector.broadcast %173 : f32 to vector<16x32xf32>
    %175 = arith.mulf %174, %112 : vector<16x32xf32>
    %176 = arith.addf %171, %175 : vector<16x32xf32>
    %c1_97 = arith.constant 1 : index
    %c0_98 = arith.constant 0 : index
    %c0_99 = arith.constant 0 : index
    %177 = vector.load %arg11[%c1_97, %c0_98, %c0_99] : memref<2x32x32xbf16, #tpu.memory_space<vmem>>, vector<1x32x32xbf16>
    %178 = vector.shape_cast %177 : vector<1x32x32xbf16> to vector<32x32xbf16>
    %179 = arith.truncf %176 : vector<16x32xf32> to vector<16x32xbf16>
    %cst_100 = arith.constant dense<0.000000e+00> : vector<16x32xf32>
    %180 = tpu.matmul %179, %178, %cst_100 {dimension_numbers = #tpu.dot_dimension_numbers<[1], [0], [0], [1], [0, 0, 1, 1], [], []>} : vector<16x32xbf16>, vector<32x32xbf16>, vector<16x32xf32> -> vector<16x32xf32>
    %181 = vector.extract_strided_slice %169 {offsets = [0, 0], sizes = [1, 32], strides = [1, 1]} : vector<6x32xf32> to vector<1x32xf32>
    %182 = vector.broadcast %181 : vector<1x32xf32> to vector<16x32xf32>
    %183 = arith.mulf %180, %182 : vector<16x32xf32>
    %184 = vector.extract_strided_slice %169 {offsets = [1, 0], sizes = [1, 32], strides = [1, 1]} : vector<6x32xf32> to vector<1x32xf32>
    %185 = vector.broadcast %184 : vector<1x32xf32> to vector<16x32xf32>
    %186 = arith.addf %183, %185 : vector<16x32xf32>
    %cst_101 = arith.constant 0.000000e+00 : f32
    %187 = vector.broadcast %cst_101 : f32 to vector<16x32xf32>
    %188 = arith.maximumf %186, %187 : vector<16x32xf32>
    %c1_102 = arith.constant 1 : index
    %c0_103 = arith.constant 0 : index
    %c0_104 = arith.constant 0 : index
    %189 = vector.load %arg12[%c1_102, %c0_103, %c0_104] : memref<2x32x32xbf16, #tpu.memory_space<vmem>>, vector<1x32x32xbf16>
    %190 = vector.shape_cast %189 : vector<1x32x32xbf16> to vector<32x32xbf16>
    %191 = arith.truncf %188 : vector<16x32xf32> to vector<16x32xbf16>
    %cst_105 = arith.constant dense<0.000000e+00> : vector<16x32xf32>
    %192 = tpu.matmul %191, %190, %cst_105 {dimension_numbers = #tpu.dot_dimension_numbers<[1], [0], [0], [1], [0, 0, 1, 1], [], []>} : vector<16x32xbf16>, vector<32x32xbf16>, vector<16x32xf32> -> vector<16x32xf32>
    %193 = vector.extract_strided_slice %169 {offsets = [2, 0], sizes = [1, 32], strides = [1, 1]} : vector<6x32xf32> to vector<1x32xf32>
    %194 = vector.broadcast %193 : vector<1x32xf32> to vector<16x32xf32>
    %195 = arith.mulf %192, %194 : vector<16x32xf32>
    %196 = vector.extract_strided_slice %169 {offsets = [3, 0], sizes = [1, 32], strides = [1, 1]} : vector<6x32xf32> to vector<1x32xf32>
    %197 = vector.broadcast %196 : vector<1x32xf32> to vector<16x32xf32>
    %198 = arith.addf %195, %197 : vector<16x32xf32>
    %cst_106 = arith.constant 0.000000e+00 : f32
    %199 = vector.broadcast %cst_106 : f32 to vector<16x32xf32>
    %200 = arith.maximumf %198, %199 : vector<16x32xf32>
    %201 = vector.extract_strided_slice %169 {offsets = [4, 0], sizes = [1, 32], strides = [1, 1]} : vector<6x32xf32> to vector<1x32xf32>
    %202 = vector.broadcast %201 : vector<1x32xf32> to vector<16x32xf32>
    %203 = arith.mulf %200, %202 : vector<16x32xf32>
    %204 = vector.extract_strided_slice %169 {offsets = [5, 0], sizes = [1, 32], strides = [1, 1]} : vector<6x32xf32> to vector<1x32xf32>
    %205 = vector.broadcast %204 : vector<1x32xf32> to vector<16x32xf32>
    %206 = arith.addf %203, %205 : vector<16x32xf32>
    %cst_107 = arith.constant 0.000000e+00 : f32
    %207 = vector.broadcast %cst_107 : f32 to vector<16x32xf32>
    %208 = arith.maximumf %206, %207 : vector<16x32xf32>
    %209 = arith.addf %208, %112 : vector<16x32xf32>
    %210 = math.tanh %209 : vector<16x32xf32>
    %c0_108 = arith.constant 0 : index
    %c0_109 = arith.constant 0 : index
    %211 = vector.load %arg18[%c0_108, %c0_109] : memref<16x64xf32, #tpu.memory_space<vmem>>, vector<16x32xf32>
    tpu.vector_store %arg18[%c0_108, %c0_109], %167 {strides = array<i32>} : memref<16x64xf32, #tpu.memory_space<vmem>>, vector<16x32xf32>,
    %c0_110 = arith.constant 0 : index
    %c32_111 = arith.constant 32 : index
    %212 = vector.load %arg18[%c0_110, %c32_111] : memref<16x64xf32, #tpu.memory_space<vmem>>, vector<16x32xf32>
    tpu.vector_store %arg18[%c0_110, %c32_111], %210 {strides = array<i32>} : memref<16x64xf32, #tpu.memory_space<vmem>>, vector<16x32xf32>,
    %c0_112 = arith.constant 0 : index
    %c0_113 = arith.constant 0 : index
    %213 = vector.load %arg18[%c0_112, %c0_113] : memref<16x64xf32, #tpu.memory_space<vmem>>, vector<16x64xf32>
    %214 = arith.truncf %213 : vector<16x64xf32> to vector<16x64xbf16>
    %cst_114 = arith.constant dense<0.000000e+00> : vector<8x64xf32>
    %215 = tpu.matmul %1, %214, %cst_114 {dimension_numbers = #tpu.dot_dimension_numbers<[1], [0], [0], [1], [0, 0, 1, 1], [], []>} : vector<8x16xbf16>, vector<16x64xbf16>, vector<8x64xf32> -> vector<8x64xf32>
    %c2_115 = arith.constant 2 : index
    %c0_116 = arith.constant 0 : index
    %c0_117 = arith.constant 0 : index
    %216 = vector.load %arg14[%c2_115, %c0_116, %c0_117] : memref<3x64x128xbf16, #tpu.memory_space<vmem>>, vector<1x64x128xbf16>
    %217 = vector.shape_cast %216 : vector<1x64x128xbf16> to vector<64x128xbf16>
    %218 = arith.truncf %215 : vector<8x64xf32> to vector<8x64xbf16>
    %cst_118 = arith.constant dense<0.000000e+00> : vector<8x128xf32>
    %219 = tpu.matmul %218, %217, %cst_118 {dimension_numbers = #tpu.dot_dimension_numbers<[1], [0], [0], [1], [0, 0, 1, 1], [], []>} : vector<8x64xbf16>, vector<64x128xbf16>, vector<8x128xf32> -> vector<8x128xf32>
    %220 = arith.addf %126, %219 : vector<8x128xf32>
    %c2_119 = arith.constant 2 : index
    %c0_120 = arith.constant 0 : index
    %c0_121 = arith.constant 0 : index
    %221 = vector.load %arg15[%c2_119, %c0_120, %c0_121] : memref<3x1x128xf32, #tpu.memory_space<vmem>>, vector<1x1x128xf32>
    %222 = vector.shape_cast %221 : vector<1x1x128xf32> to vector<1x128xf32>
    %223 = vector.broadcast %222 : vector<1x128xf32> to vector<8x128xf32>
    %224 = arith.addf %220, %223 : vector<8x128xf32>
    %c0_122 = arith.constant 0 : index
    %c0_123 = arith.constant 0 : index
    %225 = vector.load %arg17[%c0_122, %c0_123] : memref<8x128xf32, #tpu.memory_space<vmem>>, vector<8x128xf32>
    tpu.vector_store %arg17[%c0_122, %c0_123], %224 {strides = array<i32>} : memref<8x128xf32, #tpu.memory_space<vmem>>, vector<8x128xf32>,
    return
  }
}

</mosaic_0001>

<bundles_post_ra>
// kernel: gin_net_dc_forward.1
= control target key start
LH: loop header
LB: loop body
LE: loop exit
PB: predicated region body
PF: predicated region fallthrough
CT: control target
= control target key end

     0   :  { %s2350_s0 = inlined_call_operand.vmem [shape: bf16[16,16], index: 0, kind: input, shape index: {}]   ;;  %s2351_s1 = inlined_call_operand.vmem [shape: bf16[8,16], index: 1, kind: input, shape index: {}]   ;;  %s2352_s2 = inlined_call_operand.vmem [shape: f32[16,8], index: 2, kind: input, shape index: {}]   ;;  %s2353_s3 = inlined_call_operand.vmem [shape: f32[16,8], index: 3, kind: input, shape index: {}]   ;;  %s2354_s4 = inlined_call_operand.vmem [shape: bf16[8,32], index: 4, kind: input, shape index: {}]   ;;  %s2355_s5 = inlined_call_operand.vmem [shape: f32[1,32], index: 5, kind: input, shape index: {}]   ;;  %s2356_s6 = inlined_call_operand.vmem [shape: bf16[8,32], index: 6, kind: input, shape index: {}]   ;;  %s2357_s7 = inlined_call_operand.vmem [shape: f32[1,32], index: 7, kind: input, shape index: {}]   ;;  %s2358_s8 = inlined_call_operand.vmem [shape: bf16[2,64,32], index: 8, kind: input, shape index: {}]   ;;  %s2359_s9 = inlined_call_operand.vmem [shape: bf16[2,32,32], index: 9, kind: input, shape index: {}]   ;;  %s2360_s10 = inlined_call_operand.vmem [shape: f32[2,6,32], index: 10, kind: input, shape index: {}]   ;;  %s2361_s11 = inlined_call_operand.vmem [shape: bf16[2,32,32], index: 11, kind: input, shape index: {}]   ;;  %s2362_s12 = inlined_call_operand.vmem [shape: bf16[2,32,32], index: 12, kind: input, shape index: {}]   ;;  %s2363_s13 = inlined_call_operand.vmem [shape: f32[2,6,32], index: 13, kind: input, shape index: {}]   ;;  %s2364_s14 = inlined_call_operand.vmem [shape: bf16[3,64,128], index: 14, kind: input, shape index: {}]   ;;  %s2365_s15 = inlined_call_operand.vmem [shape: f32[3,1,128], index: 15, kind: input, shape index: {}]   ;;  %s2366_s16 = inlined_call_operand.vmem [shape: f32[4], index: 16, kind: input, shape index: {}]   ;;  %s2367_s17 = inlined_call_operand.vmem [shape: f32[8,128], index: 17, kind: output, shape index: {}]  }
   0x1   :  { %2368 = sst [smem:[#allocation6_spill]] %s2350_s0 }
   0x2   :  { %2369 = sst [smem:[#allocation7_spill]] %s2351_s1 }
   0x3   :  { %22 = vsyncpa [#allocation4], 0  ;;  %s61_s26 = sshll.u32 %s2366_s16, 4  ;;  %s62_s26 = int_to_ptr.vmem [resolvable:$true] %s61_s26 }
   0x4   :  { %s1895_s27 = scalar_lea.vmem %s62_s26, 16  ;;  %p1900_p1 = scmp.lt.s32.totalorder %s62_s26, %s62_s26 }
   0x5   :  { %p1896_p0 = scmp.ne.s32.totalorder %s62_s26, %s1895_s27  ;;  %p1901_p2 = scmp.lt.s32.totalorder %s1895_s27, %s1895_s27 }
   0x7   :  { %p1902_p3 = por %p1901_p2, %p1900_p1 }
   0x9   :  { %p1903_p4 = pnand %p1902_p3, %p1896_p0 }
   0xb   :  { %1906 = shalt.err (!%p1903_p4)
}
   0xc   :  { %s1909_s28 = smov [#allocation3]  }
   0xd   :  { %64 = dma.vmem_to_smem %s62_s26, 16, %s1909_s28, [#allocation4]  }
   0xe   :  { %1907 = dma.done.wait [#allocation4], 16  }
   0xf   :  { %1908 = vsyncadd [#allocation4], 4294967280 }
  0x10   :  { %68 = sfence }
  0x11   :  { %vm88_vm0 = vcmask 1043456   ;;  %v135_v0 = vld [vmem:[%s2356_s6] sm:$0xf]  ;;  %v1910_v1 = vmov 0.0   ;;  %vm1911_vm1 = vmmov 0   ;;  %v134_v4 = vld [vmem:[%s2353_s3 + $0x8] sm:$0xff]  ;;  %v468_v57 = vlaneseq }
  0x12   :  { %1694 = vmatprep.subr.bf16.mxu1 %v1910_v1  ;;  %v148_v2 = vsel %vm88_vm0, %v135_v0, 0  ;;  %1696 = vmatprep.mubr.msk.bf16.mxu1 %vm1911_vm1, %v1910_v1  ;;  %v133_v3 = vld [vmem:[%s2353_s3] sm:$0xff]  ;;  %vm84_vm2 = vcmask 64512   ;;  %v74_v9 = vld [vmem:[%s2352_s2 + $0x8] sm:$0xff]  ;;  %vm191_vm3 = vcmask 261120   ;;  %s1912_s25 = smov 32  }
  0x13   :  { %v75_v5 = vld [vmem:[%s2354_s4] sm:$0xf]  ;;  %1695 = vmatpush3.bf16.msra.mxu1 %v148_v2  ;;  %v136_v6 = vpack.c.bf16 %v134_v4, %v133_v3  ;;  %1688 = vmatprep.subr.bf16.mxu0 %v1910_v1  ;;  %v1856_v26 = vld [vmem:[%s2364_s14 + $0x8] sm:$0xff]   ;;  %v1857_v27 = vld [vmem:[%s2364_s14 + $0x10] sm:$0xff]   ;;  %vm202_vm4 = vcmask 523520   ;;  %s2370_s30 = sld [smem:[#allocation7_spill]] }
  0x14   :  { %v90_v7 = vsel %vm88_vm0, %v75_v5, 0  ;;  %v73_v8 = vld [vmem:[%s2352_s2] sm:$0xff]  ;;  %1690 = vmatprep.mubr.msk.bf16.mxu0 %vm1911_vm1, %v1910_v1  ;;  %1706 = vmatprep.subr.bf16.mxu1 %v1910_v1  ;;  %vm208_vm5 = vcmask 130048   ;;  %s2371_s1 = sld [smem:[#allocation6_spill]]  ;;  %v1858_v35 = vld [vmem:[%s2364_s14 + $0x18] sm:$0xff]   ;;  %v1860_v37 = vld [vmem:[%s2358_s8 + $0x8] sm:$0xff]  }
  0x15   :  { %1689 = vmatpush3.bf16.msra.mxu0 %v90_v7  ;;  %v76_v10 = vpack.c.bf16 %v74_v9, %v73_v8  ;;  %v1528_v11 = vld [vmem:[%s2357_s7] ss:$0 sm:$0xff]  ;;  %v1861_v38 = vld [vmem:[%s2358_s8 + $0x10] sm:$0xff]   ;;  %v1862_v39 = vld [vmem:[%s2358_s8 + $0x18] sm:$0xff]   ;;  %s337_s7 = sld [smem:[#allocation3]]  ;;  %vm292_vm6 = vcmask 523264  }
  0x16   :  { %1700 = vmatprep.subr.bf16.mxu0 %v1910_v1  ;;  %1697 = vmatmul.mubr.msk.bf16.vlgmr.msra.gmra.mrb[0].mxu1 %vm84_vm2, %v136_v6  ;;  %v1526_v12 = vld [vmem:[%s2355_s5] ss:$0 sm:$0xff]  ;;  %v1864_v56 = vld [vmem:[%s2359_s9 + $0x8] sm:$0xff]   ;;  %v469_v60 = vshrl.u32 %v468_v57, 7  ;;  %s1547_s6 = sld [smem:[#allocation3 + $0x1]]  ;;  %s1572_s23 = sld [smem:[#allocation3 + $0x2]] }
  0x17   :  { %1714 = vmatprep.mubr.msk.bf16.mxu1 %vm1911_vm1, %v1910_v1  ;;  %v1855_v25 = vld [vmem:[%s2364_s14] sm:$0xff]   ;;  %s1595_s0 = sld [smem:[#allocation3 + $0x3]] }
  0x18   :  { %1691 = vmatmul.mubr.msk.bf16.vlgmr.msra.gmra.mrb[0].mxu0 %vm84_vm2, %v76_v10  ;;  %1707 = vmatpush3.bf16.msra.mxu1 %v1855_v25  ;;  %v1859_v36 = vld [vmem:[%s2358_s8] sm:$0xff]   ;;  %v2122_v63 = vsub.s32 0, %v469_v60  ;;  %v2127_v2 = vsub.s32 1, %v469_v60  ;;  %v2155_v25 = vsub.s32 4, %v469_v60 }
  0x19   :  { %1702 = vmatprep.mubr.msk.bf16.mxu0 %vm1911_vm1, %v1910_v1  ;;  %1708 = vmatprep.subr.bf16.mxu1 %v1910_v1  ;;  %v2069_v33 = vld [vmem:[%s2370_s30] sm:$0xf] }
  0x1a   :  { %v2080_v34 = vld [vmem:[%s2371_s1] sm:$0xff]  }
  0x1b   :  { %s338_s26 = sadd.f32 1.0, %s337_s7  ;;  %v1863_v55 = vld [vmem:[%s2359_s9] sm:$0xff]  }
  0x1c   :  { %1709 = vmatpush3.bf16.msra.mxu1 %v1856_v26  ;;  %v336_v0 = vld [vmem:[%s2360_s10] sm:$0x3f]  ;;  %s574_s21 = sadd.f32 1.0, %s1547_s6 }
  0x1d   :  { %1710 = vmatprep.subr.bf16.mxu1 %v1910_v1  ;;  %v339_v45 = vstv %s338_s26  ;;  %v471_v3 = vrot.slane %v336_v0, %v2122_v63  ;;  %v477_v4 = vrot.slane %v336_v0, %v2127_v2  ;;  %v1867_v57 = vld [vmem:[%s2362_s12] sm:$0xff]   ;;  %s932_s3 = sadd.f32 1.0, %s1572_s23 }
  0x1e   :  { %s1163_s16 = sadd.f32 1.0, %s1595_s0 }
  0x20   :  { %1711 = vmatpush3.bf16.msra.mxu1 %v1857_v27 }
  0x21   :  { %1712 = vmatprep.subr.bf16.mxu1 %v1910_v1 }
  0x24   :  { %1713 = vmatpush3.bf16.msra.mxu1 %v1858_v35 }
  0x25   :  { %1736 = vmatprep.subr.bf16.mxu1 %v1910_v1 }
  0xe9   :  { %v184_v13 = vpop.f32.mrb[0].mxu1 }
  0xea   :  { %v2042_v14 = vadd.f32 %v1528_v11, %v184_v13  ;;  %v1698_v15 = vpop.f32.mrb[1].mxu1 }
  0xeb   :  { %v126_v16 = vpop.f32.mrb[0].mxu0  ;;  %v187_v17 = vpop.f32.mrb[2].mxu1 }
  0xec   :  { %v127_v18 = vadd.f32 %v1526_v12, %v126_v16  ;;  %v1692_v19 = vpop.f32.mrb[1].mxu0  ;;  %196 = vrot.lane.b32.xlu0 %v2042_v14, %s1912_s25  ;;  %v1699_v20 = vpop.f32.mrb[3].mxu1  ;;  %v2047_v24 = vadd.f32 %v1528_v11, %v187_v17 }
  0xed   :  { %v129_v21 = vpop.f32.mrb[2].mxu0  ;;  %v1866_v19 = vld [vmem:[%s2361_s11 + $0x8] sm:$0xff]   ;;  %v2149_v20 = vsub.s32 2, %v469_v60 }
  0xee   :  { %192 = vst.msk [vmem:[#allocation2] sm:$0xff] %vm191_vm3, %v127_v18  ;;  %v130_v22 = vadd.f32 %v1526_v12, %v129_v21  ;;  %v1693_v23 = vpop.f32.mrb[3].mxu0  ;;  %v572_v17 = vpack.c.bf16 %v2047_v24, %v2042_v14  ;;  %v1865_v18 = vld [vmem:[%s2361_s11] sm:$0xff]   ;;  %v2151_v21 = vsub.s32 3, %v469_v60 }
  0xf0   :  { %193 = vst.msk [vmem:[#allocation2 + $0x8] sm:$0xff] %vm191_vm3, %v130_v22  ;;  %198 = vrot.lane.b32.xlu0 %v2047_v24, %s1912_s25  ;;  %v546_v22 = vrot.slane %v336_v0, %v2149_v20  ;;  %v552_v23 = vrot.slane %v336_v0, %v2151_v21 }
 0x15e   :  { %v197_v28 = vpop.permute.xlu0 %196 }
 0x15f   :  { %203 = vst.msk [vmem:[#allocation2] sm:$0xff] %vm202_vm4, %v197_v28  ;;  %v2157_v28 = vsub.s32 5, %v469_v60  ;;  %v571_v60 = vld [vmem:[%s2363_s13] sm:$0x3f] }
 0x162   :  { %v199_v29 = vpop.permute.xlu0 %198 }
 0x163   :  { %204 = vst.msk [vmem:[#allocation2 + $0x8] sm:$0xff] %vm202_vm4, %v199_v29 }
 0x166   :  { %v205_v30 = vld [vmem:[#allocation2] sm:$0xff] }
 0x167   :  { %v340_v47 = vmul.f32 %v339_v45, %v205_v30 }
 0x16a   :  { %v206_v31 = vld [vmem:[#allocation2 + $0x8] sm:$0xff] }
 0x16b   :  { %v207_v32 = vpack.c.bf16 %v206_v31, %v205_v30  ;;  %v341_v49 = vmul.f32 %v339_v45, %v206_v31 }
 0x16d   :  { %1701 = vmatpush3.bf16.msra.mxu0 %v207_v32 }
 0x16e   :  { %1718 = vmatprep.subr.bf16.mxu0 %v1910_v1 }
 0x170   :  { %1703 = vmatmul.mubr.msk.bf16.vlgmr.msra.gmra.mrb[4].mxu0 %vm208_vm5, %v2069_v33 }
 0x171   :  { %1719 = vmatpush3.bf16.msra.mxu0 %v207_v32  ;;  %1720 = vmatprep.mubr.msk.bf16.mxu0 %vm1911_vm1, %v1910_v1  ;;  %v560_v32 = vrot.slane %v336_v0, %v2155_v25 }
 0x172   :  { %1724 = vmatprep.subr.bf16.mxu0 %v1910_v1 }
 0x178   :  { %1721 = vmatmul.mubr.msk.bf16.vlgmr.msra.gmra.mrb[8].mxu0 %vm208_vm5, %v2080_v34 }
 0x179   :  { %1732 = vmatprep.mubr.msk.bf16.mxu0 %vm1911_vm1, %v1910_v1  ;;  %1725 = vmatpush3.bf16.msra.mxu0 %v1859_v36 }
 0x17a   :  { %1726 = vmatprep.subr.bf16.mxu0 %v1910_v1 }
 0x17d   :  { %1727 = vmatpush3.bf16.msra.mxu0 %v1860_v37 }
 0x17e   :  { %1728 = vmatprep.subr.bf16.mxu0 %v1910_v1 }
 0x181   :  { %1729 = vmatpush3.bf16.msra.mxu0 %v1861_v38  ;;  %v566_v38 = vrot.slane %v336_v0, %v2157_v28 }
 0x182   :  { %1730 = vmatprep.subr.bf16.mxu0 %v1910_v1 }
 0x185   :  { %1731 = vmatpush3.bf16.msra.mxu0 %v1862_v39 }
 0x186   :  { %1750 = vmatprep.subr.bf16.mxu0 %v1910_v1 }
 0x243   :  { %v246_v40 = vpop.f32.mrb[4].mxu0 }
 0x244   :  { %v260_v41 = vpack.c.bf16 %v246_v40, %v246_v40  ;;  %v1704_v42 = vpop.f32.mrb[5].mxu0  ;;  %v575_v40 = vstv %s574_s21 }
 0x245   :  { %v249_v43 = vpop.f32.mrb[6].mxu0 }
 0x246   :  { %v1705_v44 = vpop.f32.mrb[7].mxu0  ;;  %1715 = vmatmul.mubr.msk.bf16.vlgmr.msra.gmra.mrb[4].mxu1 %vm292_vm6, %v260_v41 }
 0x247   :  { %1740 = vmatprep.mubr.msk.bf16.mxu1 %vm1911_vm1, %v1910_v1  ;;  %1737 = vmatpush3.bf16.msra.mxu1 %v1863_v55 }
 0x248   :  { %1738 = vmatprep.subr.bf16.mxu1 %v1910_v1 }
 0x24b   :  { %v384_v46 = vpop.f32.mrb[8].mxu0  ;;  %1739 = vmatpush3.bf16.msra.mxu1 %v1864_v56 }
 0x24c   :  { %v1722_v48 = vpop.f32.mrb[9].mxu0  ;;  %v385_v51 = vadd.f32 %v384_v46, %v340_v47  ;;  %1744 = vmatprep.subr.bf16.mxu1 %v1910_v1  ;;  %v576_v46 = vmul.f32 %v575_v40, %v2042_v14 }
 0x24d   :  { %v387_v50 = vpop.f32.mrb[10].mxu0  ;;  %v577_v48 = vmul.f32 %v575_v40, %v2047_v24 }
 0x24e   :  { %v388_v52 = vadd.f32 %v387_v50, %v341_v49  ;;  %v1723_v53 = vpop.f32.mrb[11].mxu0 }
 0x250   :  { %v399_v54 = vpack.c.bf16 %v388_v52, %v385_v51 }
 0x252   :  { %1733 = vmatmul.mubr.msk.bf16.vlgmr.msra.gmra.mrb[12].mxu0 %vm292_vm6, %v399_v54 }
 0x253   :  { %1754 = vmatprep.mubr.msk.bf16.mxu0 %vm1911_vm1, %v1910_v1  ;;  %1751 = vmatpush3.bf16.msra.mxu0 %v1865_v18 }
 0x254   :  { %1752 = vmatprep.subr.bf16.mxu0 %v1910_v1 }
 0x257   :  { %1753 = vmatpush3.bf16.msra.mxu0 %v1866_v19 }
 0x258   :  { %1766 = vmatprep.subr.bf16.mxu0 %v1910_v1 }
 0x319   :  { %v2120_v58 = vpop.f32.mrb[4].mxu1 }
 0x31a   :  { %v1716_v59 = vpop.f32.mrb[5].mxu1 }
 0x31b   :  { %v333_v61 = vpop.f32.mrb[6].mxu1  ;;  %v1868_v59 = vld [vmem:[%s2362_s12 + $0x8] sm:$0xff]  }
 0x31c   :  { %v1717_v62 = vpop.f32.mrb[7].mxu1  ;;  %v683_v61 = vrot.slane %v571_v60, %v2122_v63 }
 0x31d   :  { %v689_v62 = vrot.slane %v571_v60, %v2127_v2 }
 0x325   :  { %v461_v5 = vpop.f32.mrb[12].mxu0 }
 0x326   :  { %v472_v6 = vmul.f32 %v471_v3, %v461_v5  ;;  %v1734_v7 = vpop.f32.mrb[13].mxu0 }
 0x327   :  { %v464_v8 = vpop.f32.mrb[14].mxu0 }
 0x328   :  { %v478_v9 = vadd.f32 %v477_v4, %v472_v6  ;;  %v473_v10 = vmul.f32 %v471_v3, %v464_v8  ;;  %v1735_v11 = vpop.f32.mrb[15].mxu0 }
 0x32a   :  { %v479_v12 = vadd.f32 %v477_v4, %v473_v10  ;;  %v480_v13 = vmax.f32 %v478_v9, 0.0 }
 0x32c   :  { %v481_v15 = vmax.f32 %v479_v12, 0.0 }
 0x32e   :  { %v486_v16 = vpack.c.bf16 %v481_v15, %v480_v13  ;;  %v758_v13 = vrot.slane %v571_v60, %v2149_v20  ;;  %v764_v15 = vrot.slane %v571_v60, %v2151_v21 }
 0x330   :  { %1741 = vmatmul.mubr.msk.bf16.vlgmr.msra.gmra.mrb[8].mxu1 %vm191_vm3, %v486_v16 }
 0x331   :  { %1745 = vmatpush3.bf16.msra.mxu1 %v572_v17  ;;  %1746 = vmatprep.mubr.msk.bf16.mxu1 %vm1911_vm1, %v1910_v1 }
 0x332   :  { %1758 = vmatprep.subr.bf16.mxu1 %v1910_v1 }
 0x338   :  { %1747 = vmatmul.mubr.msk.bf16.vlgmr.msra.gmra.mrb[12].mxu1 %vm208_vm5, %v2080_v34 }
 0x339   :  { %1762 = vmatprep.mubr.msk.bf16.mxu1 %vm1911_vm1, %v1910_v1  ;;  %1759 = vmatpush3.bf16.msra.mxu1 %v1867_v57 }
 0x33a   :  { %1760 = vmatprep.subr.bf16.mxu1 %v1910_v1 }
 0x33d   :  { %1761 = vmatpush3.bf16.msra.mxu1 %v1868_v59 }
 0x33e   :  { %1772 = vmatprep.subr.bf16.mxu1 %v1910_v1 }
 0x403   :  { %v536_v26 = vpop.f32.mrb[8].mxu1 }
 0x404   :  { %v547_v27 = vmul.f32 %v546_v22, %v536_v26  ;;  %v1742_v29 = vpop.f32.mrb[9].mxu1 }
 0x405   :  { %v539_v30 = vpop.f32.mrb[10].mxu1 }
 0x406   :  { %v553_v31 = vadd.f32 %v552_v23, %v547_v27  ;;  %v548_v35 = vmul.f32 %v546_v22, %v539_v30  ;;  %v1743_v36 = vpop.f32.mrb[11].mxu1  ;;  %v778_v30 = vrot.slane %v571_v60, %v2157_v28 }
 0x408   :  { %v555_v37 = vmax.f32 %v553_v31, 0.0  ;;  %v554_v39 = vadd.f32 %v552_v23, %v548_v35  ;;  %v772_v23 = vrot.slane %v571_v60, %v2155_v25 }
 0x40a   :  { %v561_v41 = vmul.f32 %v560_v32, %v555_v37  ;;  %v556_v42 = vmax.f32 %v554_v39, 0.0 }
 0x40b   :  { %v612_v43 = vpop.f32.mrb[12].mxu1 }
 0x40c   :  { %v567_v44 = vadd.f32 %v566_v38, %v561_v41  ;;  %v562_v45 = vmul.f32 %v560_v32, %v556_v42  ;;  %v1748_v47 = vpop.f32.mrb[13].mxu1  ;;  %v613_v52 = vadd.f32 %v612_v43, %v576_v46 }
 0x40d   :  { %v615_v49 = vpop.f32.mrb[14].mxu1 }
 0x40e   :  { %v569_v50 = vmax.f32 %v567_v44, 0.0  ;;  %v568_v51 = vadd.f32 %v566_v38, %v562_v45  ;;  %v616_v53 = vadd.f32 %v615_v49, %v577_v48  ;;  %v1749_v54 = vpop.f32.mrb[15].mxu1  ;;  %v1869_v45 = vld [vmem:[%s2364_s14 + $0x20] sm:$0xff]  }
 0x40f   :  { %v1875_v54 = vld [vmem:[%s2358_s8 + $0x30] sm:$0xff]  }
 0x410   :  { %787 = vst.msk [vmem:[#allocation2] sm:$0xff] %vm191_vm3, %v569_v50  ;;  %v570_v55 = vmax.f32 %v568_v51, 0.0  ;;  %v623_v56 = vpack.c.bf16 %v616_v53, %v613_v52  ;;  %v1872_v51 = vld [vmem:[%s2364_s14 + $0x38] sm:$0xff]   ;;  %v1873_v52 = vld [vmem:[%s2358_s8 + $0x20] sm:$0xff]   ;;  %v1874_v53 = vld [vmem:[%s2358_s8 + $0x28] sm:$0xff]  }
 0x412   :  { %788 = vst.msk [vmem:[#allocation2 + $0x8] sm:$0xff] %vm191_vm3, %v570_v55  ;;  %1755 = vmatmul.mubr.msk.bf16.vlgmr.msra.gmra.mrb[16].mxu0 %vm191_vm3, %v623_v56  ;;  %v1876_v55 = vld [vmem:[%s2358_s8 + $0x38] sm:$0xff]  }
 0x413   :  { %1768 = vmatprep.mubr.msk.bf16.mxu0 %vm1911_vm1, %v1910_v1 }
 0x4e5   :  { %v673_v0 = vpop.f32.mrb[16].mxu0 }
 0x4e6   :  { %v684_v3 = vmul.f32 %v683_v61, %v673_v0  ;;  %v1756_v4 = vpop.f32.mrb[17].mxu0 }
 0x4e7   :  { %v676_v5 = vpop.f32.mrb[18].mxu0 }
 0x4e8   :  { %v690_v6 = vadd.f32 %v689_v62, %v684_v3  ;;  %v685_v7 = vmul.f32 %v683_v61, %v676_v5  ;;  %v1757_v8 = vpop.f32.mrb[19].mxu0 }
 0x4ea   :  { %v691_v9 = vadd.f32 %v689_v62, %v685_v7  ;;  %v692_v10 = vmax.f32 %v690_v6, 0.0  ;;  %v933_v62 = vstv %s932_s3 }
 0x4ec   :  { %v693_v11 = vmax.f32 %v691_v9, 0.0 }
 0x4ee   :  { %v698_v12 = vpack.c.bf16 %v693_v11, %v692_v10  ;;  %v1877_v11 = vld [vmem:[%s2359_s9 + $0x10] sm:$0xff]  }
 0x4f0   :  { %1763 = vmatmul.mubr.msk.bf16.vlgmr.msra.gmra.mrb[16].mxu1 %vm191_vm3, %v698_v12  ;;  %v1878_v12 = vld [vmem:[%s2359_s9 + $0x18] sm:$0xff]  }
 0x4f1   :  { %1780 = vmatprep.mubr.msk.bf16.mxu1 %vm1911_vm1, %v1910_v1  ;;  %1773 = vmatpush3.bf16.msra.mxu1 %v1869_v45  ;;  %v1880_v45 = vld [vmem:[%s2361_s11 + $0x18] sm:$0xff]  }
 0x4f2   :  { %1774 = vmatprep.subr.bf16.mxu1 %v1910_v1 }
 0x5c3   :  { %v748_v16 = vpop.f32.mrb[16].mxu1 }
 0x5c4   :  { %v759_v17 = vmul.f32 %v758_v13, %v748_v16  ;;  %v1764_v18 = vpop.f32.mrb[17].mxu1 }
 0x5c5   :  { %v751_v19 = vpop.f32.mrb[18].mxu1 }
 0x5c6   :  { %v765_v22 = vadd.f32 %v764_v15, %v759_v17  ;;  %v760_v26 = vmul.f32 %v758_v13, %v751_v19  ;;  %v1765_v27 = vpop.f32.mrb[19].mxu1  ;;  %v1531_v13 = vld [vmem:[%s2365_s15] ss:$0 sm:$0xff] }
 0x5c8   :  { %v767_v29 = vmax.f32 %v765_v22, 0.0  ;;  %v766_v31 = vadd.f32 %v764_v15, %v760_v26  ;;  %v331_v15 = vadd.f32 %v1531_v13, %v2120_v58  ;;  %v1881_v13 = vld [vmem:[%s2362_s12 + $0x10] sm:$0xff]  }
 0x5ca   :  { %v773_v32 = vmul.f32 %v772_v23, %v767_v29  ;;  %v768_v35 = vmax.f32 %v766_v31, 0.0 }
 0x5cc   :  { %v779_v36 = vadd.f32 %v778_v30, %v773_v32  ;;  %v774_v37 = vmul.f32 %v772_v23, %v768_v35  ;;  %v1571_v23 = vld [vmem:[%s2360_s10 + $0x8] sm:$0x3f] }
 0x5cd   :  { %v1058_v26 = vrot.slane %v1571_v23, %v2122_v63  ;;  %v1064_v27 = vrot.slane %v1571_v23, %v2127_v2 }
 0x5ce   :  { %v781_v38 = vmax.f32 %v779_v36, 0.0  ;;  %v780_v39 = vadd.f32 %v778_v30, %v774_v37 }
 0x5d0   :  { %v783_v40 = vadd.f32 %v781_v38, %v2042_v14  ;;  %v782_v41 = vmax.f32 %v780_v39, 0.0  ;;  %v1870_v14 = vld [vmem:[%s2364_s14 + $0x28] sm:$0xff]  }
 0x5d1   :  { %1775 = vmatpush3.bf16.msra.mxu1 %v1870_v14  ;;  %v1140_v14 = vrot.slane %v1571_v23, %v2151_v21 }
 0x5d2   :  { %1887 = vtanh.f32 %v783_v40  ;;  %v784_v42 = vadd.f32 %v782_v41, %v2047_v24  ;;  %v1871_v24 = vld [vmem:[%s2364_s14 + $0x30] sm:$0xff]   ;;  %1776 = vmatprep.subr.bf16.mxu1 %v1910_v1 }
 0x5d4   :  { %1889 = vtanh.f32 %v784_v42  ;;  %v1879_v42 = vld [vmem:[%s2361_s11 + $0x10] sm:$0xff]  }
 0x5d5   :  { %1777 = vmatpush3.bf16.msra.mxu1 %v1871_v24 }
 0x5d6   :  { %1778 = vmatprep.subr.bf16.mxu1 %v1910_v1 }
 0x5d9   :  { %1779 = vmatpush3.bf16.msra.mxu1 %v1872_v51 }
 0x5da   :  { %1802 = vmatprep.subr.bf16.mxu1 %v1910_v1 }
 0x5dc   :  { %v2190_v43 = vpop.eup %1887 }
 0x5dd   :  { %791 = vrot.lane.b32.xlu1 %v2190_v43, %s1912_s25 }
 0x5de   :  { %v2194_v44 = vpop.eup %1889 }
 0x5df   :  { %v1161_v41 = vpack.c.bf16 %v2194_v44, %v2190_v43 }
 0x5e1   :  { %793 = vrot.lane.b32.xlu1 %v2194_v44, %s1912_s25 }
 0x64f   :  { %v792_v46 = vpop.permute.xlu1 %791 }
 0x650   :  { %797 = vst.msk [vmem:[#allocation2] sm:$0xff] %vm202_vm4, %v792_v46 }
 0x653   :  { %v794_v47 = vpop.permute.xlu1 %793 }
 0x654   :  { %798 = vst.msk [vmem:[#allocation2 + $0x8] sm:$0xff] %vm202_vm4, %v794_v47 }
 0x657   :  { %v799_v48 = vld [vmem:[#allocation2] sm:$0xff] }
 0x658   :  { %v934_v3 = vmul.f32 %v933_v62, %v799_v48 }
 0x65b   :  { %v800_v49 = vld [vmem:[#allocation2 + $0x8] sm:$0xff] }
 0x65c   :  { %v801_v50 = vpack.c.bf16 %v800_v49, %v799_v48  ;;  %v935_v5 = vmul.f32 %v933_v62, %v800_v49 }
 0x65e   :  { %1767 = vmatpush3.bf16.msra.mxu0 %v801_v50 }
 0x65f   :  { %1784 = vmatprep.subr.bf16.mxu0 %v1910_v1 }
 0x661   :  { %1769 = vmatmul.mubr.msk.bf16.vlgmr.msra.gmra.mrb[20].mxu0 %vm208_vm5, %v2069_v33 }
 0x662   :  { %1785 = vmatpush3.bf16.msra.mxu0 %v801_v50  ;;  %1786 = vmatprep.mubr.msk.bf16.mxu0 %vm1911_vm1, %v1910_v1  ;;  %v1148_v50 = vrot.slane %v1571_v23, %v2155_v25 }
 0x663   :  { %1790 = vmatprep.subr.bf16.mxu0 %v1910_v1 }
 0x669   :  { %1787 = vmatmul.mubr.msk.bf16.vlgmr.msra.gmra.mrb[24].mxu0 %vm208_vm5, %v2080_v34 }
 0x66a   :  { %1798 = vmatprep.mubr.msk.bf16.mxu0 %vm1911_vm1, %v1910_v1  ;;  %1791 = vmatpush3.bf16.msra.mxu0 %v1873_v52 }
 0x66b   :  { %1792 = vmatprep.subr.bf16.mxu0 %v1910_v1 }
 0x66e   :  { %1793 = vmatpush3.bf16.msra.mxu0 %v1874_v53 }
 0x66f   :  { %1794 = vmatprep.subr.bf16.mxu0 %v1910_v1 }
 0x672   :  { %1795 = vmatpush3.bf16.msra.mxu0 %v1875_v54  ;;  %v1154_v54 = vrot.slane %v1571_v23, %v2157_v28 }
 0x673   :  { %1796 = vmatprep.subr.bf16.mxu0 %v1910_v1 }
 0x676   :  { %1797 = vmatpush3.bf16.msra.mxu0 %v1876_v55 }
 0x677   :  { %1816 = vmatprep.subr.bf16.mxu0 %v1910_v1 }
 0x734   :  { %v836_v56 = vpop.f32.mrb[20].mxu0 }
 0x735   :  { %v851_v57 = vpack.c.bf16 %v836_v56, %v836_v56  ;;  %v1770_v59 = vpop.f32.mrb[21].mxu0  ;;  %v1164_v56 = vstv %s1163_s16 }
 0x736   :  { %v839_v60 = vpop.f32.mrb[22].mxu0 }
 0x737   :  { %v1771_v61 = vpop.f32.mrb[23].mxu0  ;;  %1781 = vmatmul.mubr.msk.bf16.vlgmr.msra.gmra.mrb[20].mxu1 %vm292_vm6, %v851_v57 }
 0x738   :  { %1806 = vmatprep.mubr.msk.bf16.mxu1 %vm1911_vm1, %v1910_v1  ;;  %1803 = vmatpush3.bf16.msra.mxu1 %v1877_v11 }
 0x739   :  { %1804 = vmatprep.subr.bf16.mxu1 %v1910_v1 }
 0x73c   :  { %v970_v0 = vpop.f32.mrb[24].mxu0  ;;  %1805 = vmatpush3.bf16.msra.mxu1 %v1878_v12 }
 0x73d   :  { %v1788_v4 = vpop.f32.mrb[25].mxu0  ;;  %v971_v7 = vadd.f32 %v970_v0, %v934_v3  ;;  %1810 = vmatprep.subr.bf16.mxu1 %v1910_v1  ;;  %v1165_v0 = vmul.f32 %v2190_v43, %v1164_v56 }
 0x73e   :  { %v973_v6 = vpop.f32.mrb[26].mxu0  ;;  %v1166_v4 = vmul.f32 %v2194_v44, %v1164_v56 }
 0x73f   :  { %v974_v8 = vadd.f32 %v973_v6, %v935_v5  ;;  %v1789_v9 = vpop.f32.mrb[27].mxu0 }
 0x741   :  { %v986_v10 = vpack.c.bf16 %v974_v8, %v971_v7 }
 0x743   :  { %1799 = vmatmul.mubr.msk.bf16.vlgmr.msra.gmra.mrb[28].mxu0 %vm292_vm6, %v986_v10 }
 0x744   :  { %1820 = vmatprep.mubr.msk.bf16.mxu0 %vm1911_vm1, %v1910_v1  ;;  %1817 = vmatpush3.bf16.msra.mxu0 %v1879_v42 }
 0x745   :  { %1818 = vmatprep.subr.bf16.mxu0 %v1910_v1 }
 0x748   :  { %1819 = vmatpush3.bf16.msra.mxu0 %v1880_v45 }
 0x749   :  { %1832 = vmatprep.subr.bf16.mxu0 %v1910_v1 }
 0x80a   :  { %v913_v16 = vpop.f32.mrb[20].mxu1 }
 0x80b   :  { %v2260_v17 = vadd.f32 %v913_v16, %v331_v15  ;;  %v1782_v18 = vpop.f32.mrb[21].mxu1  ;;  %v1882_v15 = vld [vmem:[%s2362_s12 + $0x18] sm:$0xff]   ;;  %v1594_v16 = vld [vmem:[%s2363_s13 + $0x8] sm:$0x3f] }
 0x80c   :  { %v916_v19 = vpop.f32.mrb[22].mxu1  ;;  %v1273_v18 = vrot.slane %v1594_v16, %v2122_v63  ;;  %v1349_v63 = vrot.slane %v1594_v16, %v2149_v20  ;;  %v1363_v42 = vrot.slane %v1594_v16, %v2155_v25 }
 0x80d   :  { %v1783_v22 = vpop.f32.mrb[23].mxu1  ;;  %v1279_v19 = vrot.slane %v1594_v16, %v2127_v2  ;;  %v1355_v2 = vrot.slane %v1594_v16, %v2151_v21 }
 0x816   :  { %v1048_v29 = vpop.f32.mrb[28].mxu0 }
 0x817   :  { %v1059_v30 = vmul.f32 %v1058_v26, %v1048_v29  ;;  %v1800_v31 = vpop.f32.mrb[29].mxu0 }
 0x818   :  { %v1051_v32 = vpop.f32.mrb[30].mxu0 }
 0x819   :  { %v1065_v35 = vadd.f32 %v1064_v27, %v1059_v30  ;;  %v1060_v58 = vmul.f32 %v1058_v26, %v1051_v32  ;;  %v1801_v36 = vpop.f32.mrb[31].mxu0 }
 0x81b   :  { %v1066_v37 = vadd.f32 %v1064_v27, %v1060_v58  ;;  %v1067_v38 = vmax.f32 %v1065_v35, 0.0 }
 0x81d   :  { %v1068_v39 = vmax.f32 %v1066_v37, 0.0 }
 0x81f   :  { %v1074_v40 = vpack.c.bf16 %v1068_v39, %v1067_v38 }
 0x821   :  { %1807 = vmatmul.mubr.msk.bf16.vlgmr.msra.gmra.mrb[24].mxu1 %vm191_vm3, %v1074_v40 }
 0x822   :  { %1811 = vmatpush3.bf16.msra.mxu1 %v1161_v41  ;;  %1812 = vmatprep.mubr.msk.bf16.mxu1 %vm1911_vm1, %v1910_v1 }
 0x823   :  { %1824 = vmatprep.subr.bf16.mxu1 %v1910_v1 }
 0x829   :  { %1813 = vmatmul.mubr.msk.bf16.vlgmr.msra.gmra.mrb[28].mxu1 %vm208_vm5, %v2080_v34  ;;  %v1134_v34 = vrot.slane %v1571_v23, %v2149_v20 }
 0x82a   :  { %1828 = vmatprep.mubr.msk.bf16.mxu1 %vm1911_vm1, %v1910_v1  ;;  %1825 = vmatpush3.bf16.msra.mxu1 %v1881_v13 }
 0x82b   :  { %1826 = vmatprep.subr.bf16.mxu1 %v1910_v1 }
 0x82e   :  { %1827 = vmatpush3.bf16.msra.mxu1 %v1882_v15 }
 0x82f   :  { %1838 = vmatprep.subr.bf16.mxu1 %v1910_v1 }
 0x8f4   :  { %v1124_v24 = vpop.f32.mrb[24].mxu1 }
 0x8f5   :  { %v1135_v46 = vmul.f32 %v1134_v34, %v1124_v24  ;;  %v1808_v47 = vpop.f32.mrb[25].mxu1  ;;  %v1369_v24 = vrot.slane %v1594_v16, %v2157_v28  ;;  %v1883_v28 = vld [vmem:[%s2364_s14 + $0x40] sm:$0xff]  }
 0x8f6   :  { %v1127_v48 = vpop.f32.mrb[26].mxu1 }
 0x8f7   :  { %v1141_v49 = vadd.f32 %v1140_v14, %v1135_v46  ;;  %v1136_v51 = vmul.f32 %v1134_v34, %v1127_v48  ;;  %v1809_v52 = vpop.f32.mrb[27].mxu1 }
 0x8f9   :  { %v1143_v53 = vmax.f32 %v1141_v49, 0.0  ;;  %v1142_v55 = vadd.f32 %v1140_v14, %v1136_v51 }
 0x8fb   :  { %v1149_v57 = vmul.f32 %v1148_v50, %v1143_v53  ;;  %v1144_v59 = vmax.f32 %v1142_v55, 0.0 }
 0x8fc   :  { %v1201_v60 = vpop.f32.mrb[28].mxu1 }
 0x8fd   :  { %v1155_v61 = vadd.f32 %v1154_v54, %v1149_v57  ;;  %v1150_v62 = vmul.f32 %v1148_v50, %v1144_v59  ;;  %v1814_v3 = vpop.f32.mrb[29].mxu1  ;;  %v1202_v8 = vadd.f32 %v1201_v60, %v1165_v0 }
 0x8fe   :  { %v1204_v5 = vpop.f32.mrb[30].mxu1 }
 0x8ff   :  { %v1157_v6 = vmax.f32 %v1155_v61, 0.0  ;;  %v1156_v7 = vadd.f32 %v1154_v54, %v1150_v62  ;;  %v1205_v9 = vadd.f32 %v1204_v5, %v1166_v4  ;;  %v1815_v10 = vpop.f32.mrb[31].mxu1  ;;  %v1886_v61 = vld [vmem:[%s2364_s14 + $0x58] sm:$0xff]   ;;  %v1570_v5 = vld [vmem:[%s2365_s15 + $0x1] ss:$0 sm:$0xff] }
 0x901   :  { %1378 = vst.msk [vmem:[#allocation2] sm:$0xff] %vm191_vm3, %v1157_v6  ;;  %v1158_v11 = vmax.f32 %v1156_v7, 0.0  ;;  %v1213_v12 = vpack.c.bf16 %v1205_v9, %v1202_v8  ;;  %v928_v6 = vadd.f32 %v1570_v5, %v2260_v17 }
 0x903   :  { %1379 = vst.msk [vmem:[#allocation2 + $0x8] sm:$0xff] %vm191_vm3, %v1158_v11  ;;  %1821 = vmatmul.mubr.msk.bf16.vlgmr.msra.gmra.mrb[32].mxu0 %vm191_vm3, %v1213_v12 }
 0x904   :  { %1834 = vmatprep.mubr.msk.bf16.mxu0 %vm1911_vm1, %v1910_v1 }
 0x9d6   :  { %v1263_v22 = vpop.f32.mrb[32].mxu0 }
 0x9d7   :  { %v1274_v23 = vmul.f32 %v1273_v18, %v1263_v22  ;;  %v1822_v26 = vpop.f32.mrb[33].mxu0 }
 0x9d8   :  { %v1266_v27 = vpop.f32.mrb[34].mxu0 }
 0x9d9   :  { %v1280_v29 = vadd.f32 %v1279_v19, %v1274_v23  ;;  %v1275_v30 = vmul.f32 %v1273_v18, %v1266_v27  ;;  %v1823_v31 = vpop.f32.mrb[35].mxu0 }
 0x9db   :  { %v1281_v32 = vadd.f32 %v1279_v19, %v1275_v30  ;;  %v1282_v35 = vmax.f32 %v1280_v29, 0.0 }
 0x9dd   :  { %v1283_v58 = vmax.f32 %v1281_v32, 0.0 }
 0x9df   :  { %v1289_v36 = vpack.c.bf16 %v1283_v58, %v1282_v35 }
 0x9e1   :  { %1829 = vmatmul.mubr.msk.bf16.vlgmr.msra.gmra.mrb[32].mxu1 %vm191_vm3, %v1289_v36 }
 0x9e2   :  { %1846 = vmatprep.mubr.msk.bf16.mxu1 %vm1911_vm1, %v1910_v1  ;;  %1839 = vmatpush3.bf16.msra.mxu1 %v1883_v28 }
 0x9e3   :  { %1840 = vmatprep.subr.bf16.mxu1 %v1910_v1 }
 0xab4   :  { %v1339_v37 = vpop.f32.mrb[32].mxu1 }
 0xab5   :  { %v1350_v38 = vmul.f32 %v1349_v63, %v1339_v37  ;;  %v1830_v39 = vpop.f32.mrb[33].mxu1 }
 0xab6   :  { %v1342_v40 = vpop.f32.mrb[34].mxu1 }
 0xab7   :  { %v1356_v41 = vadd.f32 %v1355_v2, %v1350_v38  ;;  %v1351_v45 = vmul.f32 %v1349_v63, %v1342_v40  ;;  %v1831_v34 = vpop.f32.mrb[35].mxu1 }
 0xab9   :  { %v1358_v14 = vmax.f32 %v1356_v41, 0.0  ;;  %v1357_v46 = vadd.f32 %v1355_v2, %v1351_v45 }
 0xabb   :  { %v1364_v47 = vmul.f32 %v1363_v42, %v1358_v14  ;;  %v1359_v48 = vmax.f32 %v1357_v46, 0.0 }
 0xabd   :  { %v1370_v49 = vadd.f32 %v1369_v24, %v1364_v47  ;;  %v1365_v50 = vmul.f32 %v1363_v42, %v1359_v48 }
 0xabf   :  { %v1372_v20 = vmax.f32 %v1370_v49, 0.0  ;;  %v1371_v51 = vadd.f32 %v1369_v24, %v1365_v50 }
 0xac1   :  { %v1374_v21 = vadd.f32 %v2190_v43, %v1372_v20  ;;  %v1373_v52 = vmax.f32 %v1371_v51, 0.0  ;;  %v1884_v43 = vld [vmem:[%s2364_s14 + $0x48] sm:$0xff]  }
 0xac2   :  { %1841 = vmatpush3.bf16.msra.mxu1 %v1884_v43 }
 0xac3   :  { %1891 = vtanh.f32 %v1374_v21  ;;  %v1375_v53 = vadd.f32 %v2194_v44, %v1373_v52  ;;  %v1885_v44 = vld [vmem:[%s2364_s14 + $0x50] sm:$0xff]   ;;  %1842 = vmatprep.subr.bf16.mxu1 %v1910_v1 }
 0xac5   :  { %1893 = vtanh.f32 %v1375_v53 }
 0xac6   :  { %1843 = vmatpush3.bf16.msra.mxu1 %v1885_v44 }
 0xac7   :  { %1844 = vmatprep.subr.bf16.mxu1 %v1910_v1 }
 0xaca   :  { %1845 = vmatpush3.bf16.msra.mxu1 %v1886_v61 }
 0xacd   :  { %v1892_v25 = vpop.eup %1891 }
 0xace   :  { %1382 = vrot.lane.b32.xlu0 %v1892_v25, %s1912_s25 }
 0xacf   :  { %v1894_v54 = vpop.eup %1893 }
 0xad0   :  { %1384 = vrot.lane.b32.xlu1 %v1894_v54, %s1912_s25 }
 0xb40   :  { %v1383_v55 = vpop.permute.xlu0 %1382 }
 0xb41   :  { %1388 = vst.msk [vmem:[#allocation2] sm:$0xff] %vm202_vm4, %v1383_v55 }
 0xb42   :  { %v1385_v56 = vpop.permute.xlu1 %1384 }
 0xb43   :  { %1389 = vst.msk [vmem:[#allocation2 + $0x8] sm:$0xff] %vm202_vm4, %v1385_v56 }
 0xb48   :  { %v1390_v57 = vld [vmem:[#allocation2] sm:$0xff] }
 0xb4a   :  { %v1391_v59 = vld [vmem:[#allocation2 + $0x8] sm:$0xff] }
 0xb4b   :  { %v1392_v60 = vpack.c.bf16 %v1391_v59, %v1390_v57 }
 0xb4d   :  { %1833 = vmatpush3.bf16.msra.mxu0 %v1392_v60 }
 0xb50   :  { %1835 = vmatmul.mubr.msk.bf16.vlgmr.msra.gmra.mrb[36].mxu0 %vm208_vm5, %v2069_v33  ;;  %v1626_v33 = vld [vmem:[%s2365_s15 + $0x2] ss:$0 sm:$0xff] }
 0xc23   :  { %v1427_v62 = vpop.f32.mrb[36].mxu0 }
 0xc24   :  { %v1442_v1 = vpack.c.bf16 %v1427_v62, %v1427_v62  ;;  %v1836_v0 = vpop.f32.mrb[37].mxu0 }
 0xc25   :  { %v1430_v3 = vpop.f32.mrb[38].mxu0 }
 0xc26   :  { %1847 = vmatmul.mubr.msk.bf16.vlgmr.msra.gmra.mrb[36].mxu1 %vm292_vm6, %v1442_v1  ;;  %v1837_v4 = vpop.f32.mrb[39].mxu0 }
 0xcf9   :  { %v1504_v7 = vpop.f32.mrb[36].mxu1 }
 0xcfa   :  { %v1510_v8 = vadd.f32 %v1504_v7, %v928_v6  ;;  %v1848_v9 = vpop.f32.mrb[37].mxu1 }
 0xcfb   :  { %v1507_v10 = vpop.f32.mrb[38].mxu1 }
 0xcfc   :  { %v1519_v11 = vadd.f32 %v1626_v33, %v1510_v8  ;;  %v1849_v12 = vpop.f32.mrb[39].mxu1 }
 0xcfe   :  { %1520 = vst [vmem:[%s2367_s17] sm:$0xff] %v1519_v11 }
 0xcff   :  { %1525 = vsyncpa [#allocation4], 1 }

</bundles_post_ra>
